<compile_context>
chip_gen: v5e
topology: v5e:2x2
jax: 0.10.0
libtpu: 0.0.40
codegen_flags: <defaults>
</compile_context>

<pallas_src>
import jax
import jax.numpy as jnp
from jax.experimental import pallas as pl
from jax.experimental.pallas import tpu as pltpu

LANE = 128          # TPU lane width (last packed dim)
R_TILE_MAX = 2048   # sublane rows / grid step: (3,2048,128)+(2048,128) f32 = 4 MiB
SMALL_N = 512       # below this, plain fused XLA elementwise wins


def _round_up(v, m):
    return ((v + m - 1) // m) * m


def _linear_kernel(x_ref, p_ref, o_ref):
    # x_ref: (3, R, 128) f32 VMEM   -- feature-major, batch packed dense
    # p_ref: (4,)        f32 SMEM   -- [w0, w1, w2, b]
    # o_ref: (R, 128)    f32 VMEM
    o_ref[...] = (p_ref[0] * x_ref[0]
                  + p_ref[1] * x_ref[1]
                  + p_ref[2] * x_ref[2]
                  + p_ref[3])


def multivariate_linear_regression(x, weight, bias):
    """x: (N, 3); weight: (1, 3); bias: (1,)  ->  (N, 1) f32."""
    n = x.shape[0]
    params = jnp.concatenate(
        [weight.reshape(-1), bias.reshape(-1)]).astype(jnp.float32)  # (4,)

    # Small batches: kernel launch + relayout is pure overhead.
    if n < SMALL_N:
        x32 = x.astype(jnp.float32)
        return x32 @ params[:3].reshape(3, 1) + params[3]

    # ---- tiling: dense (rows, 128) packing of the batch dimension ----
    rows = pl.cdiv(n, LANE)
    r_tile = min(R_TILE_MAX, max(8, _round_up(pl.cdiv(rows, 2), 8)))
    steps = _round_up(pl.cdiv(rows, r_tile), 2)   # even grid -> both v7x TCs busy
    rows_pad = steps * r_tile
    n_pad = rows_pad * LANE

    # ---- layout plumbing (wrapper side) ----
    # TODO(synk): if the upstream producer can emit feature-major (3, N) data
    # directly, this transpose+pad (one extra HBM read+write of x) disappears
    # and the kernel sits exactly at the 16 B/row HBM roofline.
    x_p = jnp.pad(x.T.astype(jnp.float32), ((0, 0), (0, n_pad - n)))
    x_p = x_p.reshape(3, rows_pad, LANE)

    out = pl.pallas_call(
        _linear_kernel,
        out_shape=jax.ShapeDtypeStruct((rows_pad, LANE), jnp.float32),
        grid=(steps,),
        in_specs=[
            # streamed, fully dense batch tiles (auto double-buffered)
            pl.BlockSpec((3, r_tile, LANE), lambda i: (0, i, 0)),
            # 4 scalars, untiled, in SMEM
            pl.BlockSpec(memory_space=pltpu.MemorySpace.SMEM),
        ],
        out_specs=pl.BlockSpec((r_tile, LANE), lambda i: (i, 0)),
        compiler_params=pltpu.CompilerParams(
            dimension_semantics=("parallel",),
        ),
        # memory-bound hint: ~12 B read + 4 B write per (padded) row
        cost_estimate=pl.CostEstimate(
            flops=6 * n_pad, transcendentals=0, bytes_accessed=16 * n_pad),
    )(x_p, params)

    # back to the PyTorch-facing (N, 1) layout
    return out.reshape(n_pad)[:n].reshape(n, 1)


if __name__ == "__main__":
    key = jax.random.PRNGKey(0)
    kx, kw, kb, kx2 = jax.random.split(key, 4)

    # Parameters matching nn.Linear(3, 1): W (1, 3), b (1,)
    weight = jax.random.uniform(kw, (1, 3), jnp.float32, minval=-0.5, maxval=0.5)
    bias = jax.random.uniform(kb, (1,), jnp.float32, minval=-0.5, maxval=0.5)

    fwd = jax.jit(multivariate_linear_regression)

    # 1) Pallas-kernel path (N large enough to pass the fast-path threshold).
    x_big = jax.random.normal(kx, (1024, 3), jnp.float32)
    out_big = jax.block_until_ready(fwd(x_big, weight, bias))
    ref_big = x_big @ weight.T + bias
    assert out_big.shape == (1024, 1)
    assert jnp.allclose(out_big, ref_big, atol=1e-5, rtol=1e-5)

    # 2) Small-batch fast path (the lab's demo-sized input).
    x_small = jax.random.normal(kx2, (8, 3), jnp.float32)
    out_small = jax.block_until_ready(fwd(x_small, weight, bias))
    ref_small = x_small @ weight.T + bias
    assert out_small.shape == (8, 1)
    assert jnp.allclose(out_small, ref_small, atol=1e-5, rtol=1e-5)

    print("KERNEL_OK")
</pallas_src>

<mosaic_0001>
module attributes {stable_mosaic.version = 11 : i64} {
  func.func @_linear_kernel(%arg0: i32, %arg1: memref<3x8x128xf32, #tpu.memory_space<vmem>>, %arg2: memref<4xf32, #tpu.memory_space<smem>>, %arg3: memref<8x128xf32, #tpu.memory_space<vmem>>) attributes {dimension_semantics = [#tpu.dimension_semantics<parallel>], iteration_bounds = array<i64: 2>, scalar_prefetch = 0 : i64, scratch_operands = 0 : i64, tpu.core_type = #tpu.core_type<tc>, window_params = [{transform_indices = @transform_0, window_bounds = array<i64: 3, 8, 128>}, {transform_indices = @transform_1, window_bounds = array<i64: 4>}, {transform_indices = @transform_2, window_bounds = array<i64: 8, 128>}]} {
    %c0 = arith.constant 0 : index
    %0 = memref.load %arg2[%c0] : memref<4xf32, #tpu.memory_space<smem>>
    %c0_0 = arith.constant 0 : index
    %c0_1 = arith.constant 0 : index
    %c0_2 = arith.constant 0 : index
    %1 = vector.load %arg1[%c0_0, %c0_1, %c0_2] : memref<3x8x128xf32, #tpu.memory_space<vmem>>, vector<1x8x128xf32>
    %2 = vector.shape_cast %1 : vector<1x8x128xf32> to vector<8x128xf32>
    %3 = vector.broadcast %0 : f32 to vector<8x128xf32>
    %4 = arith.mulf %3, %2 : vector<8x128xf32>
    %c1 = arith.constant 1 : index
    %5 = memref.load %arg2[%c1] : memref<4xf32, #tpu.memory_space<smem>>
    %c1_3 = arith.constant 1 : index
    %c0_4 = arith.constant 0 : index
    %c0_5 = arith.constant 0 : index
    %6 = vector.load %arg1[%c1_3, %c0_4, %c0_5] : memref<3x8x128xf32, #tpu.memory_space<vmem>>, vector<1x8x128xf32>
    %7 = vector.shape_cast %6 : vector<1x8x128xf32> to vector<8x128xf32>
    %8 = vector.broadcast %5 : f32 to vector<8x128xf32>
    %9 = arith.mulf %8, %7 : vector<8x128xf32>
    %10 = arith.addf %4, %9 : vector<8x128xf32>
    %c2 = arith.constant 2 : index
    %11 = memref.load %arg2[%c2] : memref<4xf32, #tpu.memory_space<smem>>
    %c2_6 = arith.constant 2 : index
    %c0_7 = arith.constant 0 : index
    %c0_8 = arith.constant 0 : index
    %12 = vector.load %arg1[%c2_6, %c0_7, %c0_8] : memref<3x8x128xf32, #tpu.memory_space<vmem>>, vector<1x8x128xf32>
    %13 = vector.shape_cast %12 : vector<1x8x128xf32> to vector<8x128xf32>
    %14 = vector.broadcast %11 : f32 to vector<8x128xf32>
    %15 = arith.mulf %14, %13 : vector<8x128xf32>
    %16 = arith.addf %10, %15 : vector<8x128xf32>
    %c3 = arith.constant 3 : index
    %17 = memref.load %arg2[%c3] : memref<4xf32, #tpu.memory_space<smem>>
    %18 = vector.broadcast %17 : f32 to vector<8x128xf32>
    %19 = arith.addf %16, %18 : vector<8x128xf32>
    %c0_9 = arith.constant 0 : index
    %c0_10 = arith.constant 0 : index
    %20 = vector.load %arg3[%c0_9, %c0_10] : memref<8x128xf32, #tpu.memory_space<vmem>>, vector<8x128xf32>
    tpu.vector_store %arg3[%c0_9, %c0_10], %19 {strides = array<i32>} : memref<8x128xf32, #tpu.memory_space<vmem>>, vector<8x128xf32>,
    return
  }
  func.func @transform_0(%arg0: i32) -> (i32, i32, i32) {
    %c0_i32 = arith.constant 0 : i32
    %c0_i32_0 = arith.constant 0 : i32
    %c0_i32_1 = arith.constant 0 : i32
    return %c0_i32, %arg0, %c0_i32_0 : i32, i32, i32
  }
  func.func @transform_1(%arg0: i32) -> i32 {
    %c0_i32 = arith.constant 0 : i32
    %c0_i32_0 = arith.constant 0 : i32
    return %c0_i32 : i32
  }
  func.func @transform_2(%arg0: i32) -> (i32, i32) {
    %c0_i32 = arith.constant 0 : i32
    %c0_i32_0 = arith.constant 0 : i32
    return %arg0, %c0_i32 : i32, i32
  }
}

</mosaic_0001>

<bundles_post_ra>
// kernel: multivariate_linear_regression.1
= control target key start
LH: loop header
LB: loop body
LE: loop exit
PB: predicated region body
PF: predicated region fallthrough
CT: control target
= control target key end

     0   :  { %7 = vsyncpa [#allocation4], 0  ;;  %s402_s9 = smov 0   ;;  %s404_s10 = smov 0   ;;  %s464_s0 = inlined_call_operand.vmem [shape: f32[3,16,128], index: 0, kind: input, shape index: {}]   ;;  %s465_s1 = inlined_call_operand.vmem [shape: f32[4], index: 1, kind: input, shape index: {}]   ;;  %s466_s2 = inlined_call_operand.vmem [shape: f32[16,128], index: 2, kind: output, shape index: {}]  }
   0x1   :  { %s406_s11 = smov 0  }
   0x2 LB: > { %s415_s12 = sadd.s32 4294967295, %s384_s11   ;;  %s417_s13 = sadd.s32 1, %s384_s11   ;;  %s384_s11 = sphi %s406_s11, %s470_s11   ;;  %s380_s10 = sphi %s404_s10, %s469_s10   ;;  %s376_s9 = sphi %s402_s9, %s468_s9  }
   0x3   : > { %s17_s14 = ssub.s32 %s384_s11, %s417_s13  ;;  %s20_s15 = sadd.s32 1, %s380_s10 }
   0x4   : > { %p18_p0 = scmp.eq.s32.totalorder %s17_s14, 0  ;;  %p27_p1 = scmp.ne.s32.totalorder %s380_s10, %s376_s9 }
   0x5   : > { %p28_p2 = scmp.eq.s32.totalorder %s384_s11, 0  ;;  %p292_p3 = scmp.ge.s32.totalorder %s384_s11, 1 }
   0x6   : > { %s424_s16 = scalar_select %p18_p0, %s380_s10, %s20_s15  }
   0x7   : > { %p29_p4 = por %p28_p2, %p27_p1  ;;  %p91_p5 = scmp.lt.s32.totalorder %s384_s11, 3 }
   0x8   : > { %p316_p6 = scmp.eq.s32.totalorder %s415_s12, 0  ;;  %s103_s20 = sshll.u32 %s465_s1, 4  ;;  %s104_s20 = int_to_ptr.vmem [resolvable:$true] %s103_s20 }
   0x9   : > { %p427_p7 = pnand %p292_p3, %p91_p5  ;;  %s386_s21 = smov [#allocation3]  }
   0xa   : > { %p294_p10 = scmp.ge.s32.totalorder %s384_s11, 2 }
   0xb   : > { %p312_p8 = pneg %p427_p7 }
   0xc   : > { %110 = sbr.rel (%p294_p10) target bundleno = 24 (0x18), region = 20 }
   0xd   : > { %p313_p9 = pnand %p316_p6, %p312_p8 }
   0xf   : > { %315 = dma.vmem_to_smem (!%p313_p9), %s104_s20, 16, %s386_s21, [#allocation4]  }
  0x11   : > { %113 = sbr.rel (!%p29_p4) target bundleno = 24 (0x18), region = 24  ;;  %s115_s22 = sand.u32 (%p29_p4), 1, %s380_s10  }
  0x12   : > { %s295_s23 = sshll.u32 (%p29_p4), %s384_s11, 3  ;;  %s306_s24 = smul.u32 (%p29_p4), 24, %s115_s22 }
  0x13   : > { %s119_s27 = scalar_lea.vmem (%p29_p4), %s464_s0, %s295_s23 }
  0x14   : > { %v152_v0 = vld [vmem:[%s119_s27] sm:$0xff] (%p29_p4)  ;;  %v154_v1 = vld [vmem:[%s119_s27 + $0x10] sm:$0xff] (%p29_p4)  ;;  %s117_s28 = scalar_lea.vmem (%p29_p4), [#allocation2], %s306_s24 }
  0x15   : > { %v156_v2 = vld [vmem:[%s119_s27 + $0x20] sm:$0xff] (%p29_p4)  ;;  %153 = vst [vmem:[%s117_s28] sm:$0xff] (%p29_p4), %v152_v0 }
  0x16   : > { %155 = vst [vmem:[%s117_s28 + $0x8] sm:$0xff] %v154_v1 }
  0x17   : > { %157 = vst [vmem:[%s117_s28 + $0x10] sm:$0xff] %v156_v2 }
  0x18 PF: > { %166 = sbr.rel (%p427_p7) target bundleno = 49 (0x31), region = 62  ;;  %s169_s29 = sand.u32 (!%p427_p7), 1, %s376_s9  }
  0x19   : > { %s307_s30 = smul.u32 (!%p427_p7), 24, %s169_s29 }
  0x1b   : > { %s171_s3 = scalar_lea.vmem (!%p427_p7), [#allocation2], %s307_s30 }
  0x1d   : > { %371 = dma.done.wait (%p316_p6), [#allocation4], 16  }
  0x1e   : > { %373 = vsyncadd (%p316_p6), [#allocation4], 4294967280 }
  0x1f   : > { %180 = sfence }
  0x20   : > { %s199_s4 = sld [smem:[#allocation3]]  ;;  %p195_p11 = scmp.lt.s32.totalorder %s415_s12, 1  ;;  %v200_v3 = vld [vmem:[%s171_s3] sm:$0xff]  ;;  %v300_v4 = vld [vmem:[%s171_s3 + $0x8] sm:$0xff]  ;;  %v302_v8 = vld [vmem:[%s171_s3 + $0x10] sm:$0xff] }
  0x21   : > { %s299_s5 = sld [smem:[#allocation3 + $0x1]] }
  0x22   : > { %s301_s6 = sld [smem:[#allocation3 + $0x2]]  ;;  %s472_s12 = smov (!%p195_p11, %s415_s12), 1 }
  0x23   : > { %s303_s7 = sld [smem:[#allocation3 + $0x3]]  ;;  %s298_s8 = sshll.u32 %s472_s12, 3 }
  0x24   : > { %s198_s14 = scalar_lea.vmem %s466_s2, %s298_s8 }
  0x26   : > { %v201_v5 = vstv %s199_s4 }
  0x27   : > { %v202_v6 = vmul.f32 %v201_v5, %v200_v3  ;;  %v206_v7 = vstv %s299_s5 }
  0x28   : > { %v207_v9 = vmul.f32 %v300_v4, %v206_v7  ;;  %v212_v10 = vstv %s301_s6 }
  0x29   : > { %v213_v12 = vmul.f32 %v302_v8, %v212_v10  ;;  %v216_v13 = vstv %s303_s7 }
  0x2a   : > { %v208_v11 = vadd.f32 %v207_v9, %v202_v6 }
  0x2c   : > { %v214_v14 = vadd.f32 %v213_v12, %v208_v11 }
  0x2e   : > { %v217_v15 = vadd.f32 %v216_v13, %v214_v14 }
  0x30   : > { %218 = vst [vmem:[%s198_s14] sm:$0xff] %v217_v15 }
  0x31 PF: > { %p10_p12 = scmp.ge.s32.totalorder %s417_s13, 4   ;;  %s468_s9 = smov %s380_s10 }
  0x32   : > { %s469_s10 = smov %s424_s16  ;;  %s470_s11 = smov %s417_s13 }
  0x33   :  { %12 = sbr.rel (!%p10_p12) target bundleno = 2 (0x2), region = 108 }
  0x38   :  { %238 = vsyncpa [#allocation4], 1 }
  0x39   :  { %240 = vsyncpa [#allocation4 + $0x1], 1 }

</bundles_post_ra>
